<compile_context>
chip_gen: v7x
topology: tpu7x:2x2x1
jax: 0.10.0
libtpu: 0.0.40
codegen_flags: <defaults>
</compile_context>

<pallas_src>
import jax
import jax.numpy as jnp
from jax.experimental import pallas as pl
from jax.experimental.pallas import tpu as pltpu


# ------------------------------- helpers ----------------------------------- #
def _round_up(a, b):
    return ((a + b - 1) // b) * b


def _cdiv(a, b):
    return (a + b - 1) // b


def _vmem_capacity_bytes():
    """Physical VMEM of the current TPU generation (fallback: v7x's 64 MiB)."""
    try:
        info = pltpu.get_tpu_info()
        cap = int(getattr(info, "vmem_capacity_bytes", 0) or 0)
        if cap > 0:
            return cap
    except Exception:
        pass
    return 64 * 1024 * 1024


def _plan_tiles(M, K128, O_pad, x_bytes, w_bytes, out_bytes):
    """Pick (tm, tk, K_pad, nk, vmem_limit) so the working set (double-buffered
    x/out tiles + weight + bias + accumulator) fits the current generation's
    VMEM (128 MiB on v5e/v6e, 64 MiB per core on v7x)."""
    cap = _vmem_capacity_bytes()
    # Scoped limit exposed to Mosaic: ~48 MiB on v7x, up to ~96 MiB on v5e/v6e.
    vmem_limit = min(int(cap * 0.75), 100 * 1024 * 1024)
    budget = int(vmem_limit * 0.85)                 # headroom for compiler scratch

    # ---- contraction (K) tiling: keep the weight slab within ~1/3 of budget.
    if K128 * O_pad * w_bytes <= budget // 3:
        tk, nk, w_bufs = K128, 1, 1                 # fully resident, single-buffered
    else:
        tk = max(128, (((budget // 3) // (2 * O_pad * w_bytes)) // 128) * 128)
        nk = _cdiv(K128, tk)
        w_bufs = 2                                  # streams over k -> double-buffered
    K_pad = nk * tk                                 # zero-pad so tk divides K exactly

    # ---- M tiling from the remaining budget.
    fixed = w_bufs * tk * O_pad * w_bytes + 8 * O_pad * 4       # weight + bias row
    per_row = (2 * tk * x_bytes                     # x tile (double-buffered)
               + 2 * O_pad * out_bytes              # out tile (double-buffered)
               + (O_pad * 4 if nk > 1 else 0))      # f32 accumulator scratch
    tm_cap = 2048 if nk == 1 else 1024              # HBM-bound: bigger tiles win
    tm = max(8, min(tm_cap, (budget - fixed) // per_row))

    sub = 16 if min(x_bytes, w_bytes, out_bytes) < 4 else 8     # bf16 sublane packing
    tm = max(sub, (tm // sub) * sub)

    # Keep >=4 (>=2) M grid steps so the "parallel" axis can shard across the
    # two TensorCores on v7x; extra steps cost only ~0.35us each on v5e/v6e.
    if M >= 4 * sub:
        tm = min(tm, _round_up(_cdiv(M, 4), sub))
    elif M >= 2 * sub:
        tm = min(tm, _round_up(_cdiv(M, 2), sub))
    tm = min(tm, _round_up(M, sub))
    if tm > M and M % 8 == 0:
        tm = M          # full-extent block: exempt from the (8,128) rule
    return tm, tk, K_pad, nk, vmem_limit


# ----------------------------- Pallas kernels ------------------------------ #
def _matmul_bias_kernel(x_ref, w_ref, b_ref, o_ref):
    # x_ref: [tm, K]      flattened-patch tile (streamed over the M grid axis)
    # w_ref: [K, O_pad]   conv weight, resident (single-buffered)
    # b_ref: [1, O_pad]   conv bias (zero-padded), resident
    # o_ref: [tm, O_pad]  lane-dense measurement tile (full vst, no masks)
    acc = jnp.dot(x_ref[...], w_ref[...], preferred_element_type=jnp.float32)
    o_ref[...] = (acc + b_ref[...]).astype(o_ref.dtype)


def _matmul_bias_ktiled_kernel(x_ref, w_ref, b_ref, o_ref, acc_ref):
    # K streamed over the last ("arbitrary") grid axis with an f32 accumulator.
    k = pl.program_id(1)

    @pl.when(k == 0)
    def _():
        acc_ref[...] = jnp.zeros_like(acc_ref)

    acc_ref[...] += jnp.dot(x_ref[...], w_ref[...],
                            preferred_element_type=jnp.float32)

    @pl.when(k == pl.num_programs(1) - 1)
    def _():
        o_ref[...] = (acc_ref[...] + b_ref[...]).astype(o_ref.dtype)


def _pallas_patch_matmul(patches, w_mat, bias_row, cost):
    """patches: [M, K128] (bf16/f32), w_mat: [K128, O_pad], bias_row: [1, O_pad] f32."""
    M, K128 = patches.shape
    _, O_pad = w_mat.shape
    x_bytes = patches.dtype.itemsize
    w_bytes = w_mat.dtype.itemsize
    out_bytes = 4                                   # f32 output

    tm, tk, K_pad, nk, vmem_limit = _plan_tiles(M, K128, O_pad,
                                                x_bytes, w_bytes, out_bytes)
    if K_pad != K128:
        # Pad contraction so tk divides it exactly; zero rows/cols are a no-op.
        patches = jnp.pad(patches, ((0, 0), (0, K_pad - K128)))
        w_mat = jnp.pad(w_mat, ((0, K_pad - K128), (0, 0)))

    # NOTE: when M % tm != 0 the last x block reads past M; those garbage rows
    # only produce output rows past M, which the wrapper never looks at.  Do
    # not rely on them if this kernel ever gains a row-wise reduction.

    resident = pl.Buffered(1)   # never changes across the grid -> single buffer

    if nk == 1:
        grid = (pl.cdiv(M, tm),)
        kernel = _matmul_bias_kernel
        in_specs = [
            pl.BlockSpec((tm, K_pad), lambda i: (i, 0)),                      # streamed
            pl.BlockSpec((K_pad, O_pad), lambda i: (0, 0), pipeline_mode=resident),
            pl.BlockSpec((1, O_pad), lambda i: (0, 0), pipeline_mode=resident),
        ]
        out_specs = pl.BlockSpec((tm, O_pad), lambda i: (i, 0))
        scratch_shapes = ()
        dims = ("parallel",)
    else:
        grid = (pl.cdiv(M, tm), nk)                 # reduction axis last
        kernel = _matmul_bias_ktiled_kernel
        in_specs = [
            pl.BlockSpec((tm, tk), lambda i, k: (i, k)),
            pl.BlockSpec((tk, O_pad), lambda i, k: (k, 0)),
            pl.BlockSpec((1, O_pad), lambda i, k: (0, 0), pipeline_mode=resident),
        ]
        out_specs = pl.BlockSpec((tm, O_pad), lambda i, k: (i, 0))
        scratch_shapes = (pltpu.VMEM((tm, O_pad), jnp.float32),)
        dims = ("parallel", "arbitrary")

    return pl.pallas_call(
        kernel,
        out_shape=jax.ShapeDtypeStruct((M, O_pad), jnp.float32),
        grid_spec=pltpu.PrefetchScalarGridSpec(
            num_scalar_prefetch=0,
            grid=grid,
            in_specs=in_specs,
            out_specs=out_specs,
            scratch_shapes=scratch_shapes,
        ),
        compiler_params=pltpu.CompilerParams(
            dimension_semantics=dims,
            vmem_limit_bytes=vmem_limit,
            allow_input_fusion=[True, False, False],   # fuse patch reshape/cast
        ),
        cost_estimate=cost,
    )(patches, w_mat, bias_row)


# -------------------------------- wrapper ----------------------------------- #
def sample_subnetwork_forward(x_nchw, weight, bias, B,
                              compute_dtype=jnp.bfloat16):
    """Forward pass of Sample_subNetwork: Conv2d(C, O, kernel_size=B, stride=B).

    x_nchw : [N, C, H, W]
    weight : [O, C, B, B]   (PyTorch Conv2d weight layout)
    bias   : [O]
    compute_dtype: dtype of the streamed matmul operands (bf16 default halves
        HBM traffic; accumulation stays f32).  Use jnp.float32 for exact
        nn.Conv2d numerics.
    returns: [N, O, H//B, W//B]  float32
    """
    N, C, H, W = x_nchw.shape
    O = weight.shape[0]
    Hb, Wb = H // B, W // B
    K = C * B * B
    M = N * Hb * Wb
    # Lane-dense output width; 256-aligned once O > 128 (v6e/v7x MXU is 256 wide).
    O_pad = _round_up(O, 128) if O <= 128 else _round_up(O, 256)
    K128 = _round_up(K, 128)     # unmasked x loads / full MXU contraction slices

    # Non-overlapping BxB patches, flattened (c, kh, kw)-major.  The conv with
    # kernel_size == stride == B is exactly `patches @ W_flat.T + bias`.
    patches = x_nchw.reshape(N, C, Hb, B, Wb, B)
    patches = jnp.transpose(patches, (0, 2, 4, 1, 3, 5))       # [N,Hb,Wb,C,B,B]
    patches = patches.reshape(M, K).astype(compute_dtype)      # [M, K]
    # TODO(synk): if an HLO dump shows this transpose materializing despite
    # allow_input_fusion, block x directly in NCHW and re-layout in-kernel
    # (XLU slot is idle here) to drop the extra HBM pass.

    # Weight: [O, C, B, B] -> [K, O] with matching (c,kh,kw) flattening.
    w_mat = jnp.transpose(weight.reshape(O, K), (1, 0)).astype(compute_dtype)
    b_row = bias.astype(jnp.float32)
    if K128 != K:
        patches = jnp.pad(patches, ((0, 0), (0, K128 - K)))
        w_mat = jnp.pad(w_mat, ((0, K128 - K), (0, 0)))
    if O_pad != O:
        w_mat = jnp.pad(w_mat, ((0, 0), (0, O_pad - O)))
        b_row = jnp.pad(b_row, (0, O_pad - O))
    b_row = b_row.reshape(1, O_pad)

    # True (un-padded) cost for the XLA scheduler.
    cost = pl.CostEstimate(
        flops=2 * M * K * O,
        transcendentals=0,
        bytes_accessed=(patches.dtype.itemsize * M * K
                        + w_mat.dtype.itemsize * K * O
                        + 4 * (M * O + O)),
    )

    y = _pallas_patch_matmul(patches, w_mat, b_row, cost)      # [M, O_pad] f32
    y = y[:, :O]                                               # drop pad columns
    y = y.reshape(N, Hb, Wb, O)
    return jnp.transpose(y, (0, 3, 1, 2))                      # [N, O, Hb, Wb]


# --------------------------------- main ------------------------------------- #
if __name__ == "__main__":
    # Small shapes consistent with the module (kernel_size == stride == B).
    B = 8
    N, C, H, W = 2, 4, 16, 16
    O = 32  # out_channels (measurements per block)

    key = jax.random.PRNGKey(0)
    kx, kw, kb = jax.random.split(key, 3)

    x = jax.random.normal(kx, (N, C, H, W), dtype=jnp.float32)
    fan_in = C * B * B
    bound = 1.0 / (fan_in ** 0.5)
    weight = jax.random.uniform(kw, (O, C, B, B), minval=-bound, maxval=bound,
                                dtype=jnp.float32)
    bias = jax.random.uniform(kb, (O,), minval=-bound, maxval=bound,
                              dtype=jnp.float32)

    # Reference: XLA conv with the same semantics as nn.Conv2d.
    ref = jax.lax.conv_general_dilated(
        x, weight, window_strides=(B, B), padding="VALID",
        dimension_numbers=("NCHW", "OIHW", "NCHW")) + bias.reshape(1, O, 1, 1)

    fwd = jax.jit(sample_subnetwork_forward,
                  static_argnums=(3,), static_argnames=("compute_dtype",))

    # Default path: bf16 streamed operands, f32 MXU accumulation.
    out_bf16 = jax.block_until_ready(fwd(x, weight, bias, B))
    # Exact-numerics path for a tight check against the conv reference.
    out_f32 = jax.block_until_ready(fwd(x, weight, bias, B,
                                        compute_dtype=jnp.float32))

    assert out_bf16.shape == (N, O, H // B, W // B)
    assert jnp.allclose(out_f32, ref, atol=1e-4, rtol=1e-4)
    assert jnp.allclose(out_bf16, ref, atol=3e-2, rtol=3e-2)

    print("KERNEL_OK")
</pallas_src>

<mosaic_0001>
module attributes {stable_mosaic.version = 11 : i64} {
  func.func @_matmul_bias_kernel(%arg0: i32, %arg1: memref<8x256xbf16, #tpu.memory_space<vmem>>, %arg2: memref<256x128xbf16, #tpu.memory_space<vmem>>, %arg3: memref<1x128xf32, #tpu.memory_space<vmem>>, %arg4: memref<8x128xf32, #tpu.memory_space<vmem>>) attributes {dimension_semantics = [#tpu.dimension_semantics<parallel>], iteration_bounds = array<i64: 1>, scalar_prefetch = 0 : i64, scratch_operands = 0 : i64, tpu.core_type = #tpu.core_type<tc>, window_params = [{transform_indices = @transform_0, window_bounds = array<i64: 8, 256>}, {pipeline_mode = #tpu.pipeline_mode<synchronous>, transform_indices = @transform_1, window_bounds = array<i64: 256, 128>}, {pipeline_mode = #tpu.pipeline_mode<synchronous>, transform_indices = @transform_2, window_bounds = array<i64: 1, 128>}, {transform_indices = @transform_3, window_bounds = array<i64: 8, 128>}]} {
    %c0 = arith.constant 0 : index
    %c0_0 = arith.constant 0 : index
    %0 = vector.load %arg1[%c0, %c0_0] : memref<8x256xbf16, #tpu.memory_space<vmem>>, vector<8x256xbf16>
    %c0_1 = arith.constant 0 : index
    %c0_2 = arith.constant 0 : index
    %1 = vector.load %arg2[%c0_1, %c0_2] : memref<256x128xbf16, #tpu.memory_space<vmem>>, vector<256x128xbf16>
    %cst = arith.constant dense<0.000000e+00> : vector<8x128xf32>
    %2 = tpu.matmul %0, %1, %cst {dimension_numbers = #tpu.dot_dimension_numbers<[1], [0], [0], [1], [0, 0, 1, 1], [], []>} : vector<8x256xbf16>, vector<256x128xbf16>, vector<8x128xf32> -> vector<8x128xf32>
    %c0_3 = arith.constant 0 : index
    %c0_4 = arith.constant 0 : index
    %3 = vector.load %arg3[%c0_3, %c0_4] : memref<1x128xf32, #tpu.memory_space<vmem>>, vector<1x128xf32>
    %4 = vector.broadcast %3 : vector<1x128xf32> to vector<8x128xf32>
    %5 = arith.addf %2, %4 : vector<8x128xf32>
    %c0_5 = arith.constant 0 : index
    %c0_6 = arith.constant 0 : index
    %6 = vector.load %arg4[%c0_5, %c0_6] : memref<8x128xf32, #tpu.memory_space<vmem>>, vector<8x128xf32>
    tpu.vector_store %arg4[%c0_5, %c0_6], %5 {strides = array<i32>} : memref<8x128xf32, #tpu.memory_space<vmem>>, vector<8x128xf32>,
    return
  }
  func.func @transform_0(%arg0: i32) -> (i32, i32) {
    %c0_i32 = arith.constant 0 : i32
    %c0_i32_0 = arith.constant 0 : i32
    return %arg0, %c0_i32 : i32, i32
  }
  func.func @transform_1(%arg0: i32) -> (i32, i32) {
    %c0_i32 = arith.constant 0 : i32
    %c0_i32_0 = arith.constant 0 : i32
    %c0_i32_1 = arith.constant 0 : i32
    return %c0_i32, %c0_i32_0 : i32, i32
  }
  func.func @transform_2(%arg0: i32) -> (i32, i32) {
    %c0_i32 = arith.constant 0 : i32
    %c0_i32_0 = arith.constant 0 : i32
    %c0_i32_1 = arith.constant 0 : i32
    return %c0_i32, %c0_i32_0 : i32, i32
  }
  func.func @transform_3(%arg0: i32) -> (i32, i32) {
    %c0_i32 = arith.constant 0 : i32
    %c0_i32_0 = arith.constant 0 : i32
    return %arg0, %c0_i32 : i32, i32
  }
}

</mosaic_0001>

<bundles_post_ra>
// kernel: sample_subnetwork_forward.1
= control target key start
LH: loop header
LB: loop body
LE: loop exit
PB: predicated region body
PF: predicated region fallthrough
CT: control target
= control target key end

     0   :  { %s385_s0 = inlined_call_operand.vmem [shape: bf16[8,256], index: 0, kind: input, shape index: {}]   ;;  %s386_s1 = inlined_call_operand.vmem [shape: bf16[256,128], index: 1, kind: input, shape index: {}]   ;;  %s387_s2 = inlined_call_operand.vmem [shape: f32[1,128], index: 2, kind: input, shape index: {}]   ;;  %s388_s3 = inlined_call_operand.hbm [shape: f32[8,128], index: 3, kind: output, shape index: {}]  }
   0x1   :  { %v256_v0 = vld [vmem:[%s386_s1 + $0x40] sm:$0xff]   ;;  %v258_v2 = vld [vmem:[%s386_s1 + $0x48] sm:$0xff]   ;;  %v260_v4 = vld [vmem:[%s386_s1 + $0x50] sm:$0xff]  }
   0x2   :  { %v257_v1 = vld [vmem:[%s386_s1] sm:$0xff]   ;;  %233 = vmatprep.subr.bf16.mxu0 %v256_v0  ;;  %v259_v3 = vld [vmem:[%s386_s1 + $0x8] sm:$0xff]   ;;  %v261_v5 = vld [vmem:[%s386_s1 + $0x10] sm:$0xff]  }
   0x3   :  { %234 = vmatpush3.bf16.msra.mxu0 %v257_v1  ;;  %v262_v6 = vld [vmem:[%s386_s1 + $0x58] sm:$0xff]   ;;  %v264_v8 = vld [vmem:[%s386_s1 + $0x60] sm:$0xff]   ;;  %v266_v10 = vld [vmem:[%s386_s1 + $0x68] sm:$0xff]  }
   0x4   :  { %235 = vmatprep.subr.bf16.mxu0 %v258_v2  ;;  %v263_v7 = vld [vmem:[%s386_s1 + $0x18] sm:$0xff]   ;;  %v265_v9 = vld [vmem:[%s386_s1 + $0x20] sm:$0xff]  }
   0x5   :  { %v16_v11 = vld [vmem:[%s385_s0] sm:$0xff] }
   0x7   :  { %236 = vmatpush3.bf16.msra.mxu0 %v259_v3 }
   0x8   :  { %237 = vmatprep.subr.bf16.mxu0 %v260_v4 }
   0xb   :  { %238 = vmatpush3.bf16.msra.mxu0 %v261_v5 }
   0xc   :  { %239 = vmatprep.subr.bf16.mxu0 %v262_v6 }
   0xf   :  { %240 = vmatpush3.bf16.msra.mxu0 %v263_v7 }
  0x10   :  { %241 = vmatprep.subr.bf16.mxu0 %v264_v8 }
  0x11   :  { %8 = vsyncpa [#allocation3], 0  ;;  %v216_v12 = vcombine.high %v16_v11, %v16_v11  ;;  %v267_v13 = vld [vmem:[%s386_s1 + $0x28] sm:$0xff]   ;;  %v268_v14 = vld [vmem:[%s386_s1 + $0x70] sm:$0xff]   ;;  %v215_v18 = vcombine.low %v16_v11, %v16_v11  ;;  %s298_s20 = smov [#allocation2]  }
  0x12   :  { %v269_v15 = vld [vmem:[%s386_s1 + $0x30] sm:$0xff]   ;;  %v270_v16 = vld [vmem:[%s386_s1 + $0x78] sm:$0xff]   ;;  %v214_v21 = vld [vmem:[%s387_s2] ss:$0 sm:$0xff]  ;;  %s206_s21 = sshll.u32 %s298_s20, 4  ;;  %s207_s21 = int_to_ptr.vmem [resolvable:$true] %s206_s21 }
  0x13   :  { %242 = vmatpush3.bf16.msra.mxu0 %v265_v9  ;;  %191 = vmatprep.mubr.bf16.mxu0 %v216_v12  ;;  %v271_v17 = vld [vmem:[%s386_s1 + $0x38] sm:$0xff]   ;;  %s274_s22 = scalar_lea.vmem %s207_s21, 128  ;;  %p279_p1 = scmp.lt.s32.totalorder %s207_s21, %s207_s21 }
  0x14   :  { %243 = vmatprep.subr.bf16.mxu0 %v266_v10  ;;  %p275_p0 = scmp.ne.s32.totalorder %s207_s21, %s274_s22  ;;  %p280_p2 = scmp.lt.s32.totalorder %s274_s22, %s274_s22 }
  0x16   :  { %p281_p3 = por %p280_p2, %p279_p1 }
  0x17   :  { %244 = vmatpush3.bf16.msra.mxu0 %v267_v13 }
  0x18   :  { %245 = vmatprep.subr.bf16.mxu0 %v268_v14  ;;  %p282_p4 = pnand %p281_p3, %p275_p0 }
  0x1b   :  { %246 = vmatpush3.bf16.msra.mxu0 %v269_v15 }
  0x1c   :  { %247 = vmatprep.subr.bf16.mxu0 %v270_v16 }
  0x1f   :  { %248 = vmatpush3.bf16.msra.mxu0 %v271_v17 }
  0x22   :  { %192 = vmatmul.mubr.bf16.vlgmr.msra.gmra.mrb[0].mxu0 %v215_v18 }
  0xf5   :  { %v249_v19 = vpop.f32.mrb[0].mxu0 }
  0xf6   :  { %v250_v20 = vpop.f32.mrb[1].mxu0 }
  0xf7   :  { %v251_v22 = vadd.f32 %v250_v20, %v249_v19  ;;  %v252_v23 = vpop.f32.mrb[2].mxu0 }
  0xf8   :  { %v253_v24 = vpop.f32.mrb[3].mxu0 }
  0xf9   :  { %v194_v25 = vadd.f32 %v251_v22, %v214_v21 }
  0xfb   :  { %199 = vst [vmem:[#allocation2] sm:$0xff] %v194_v25 }
  0xfc   :  { %285 = shalt.err (!%p282_p4)
}
  0xfd   :  { %s286_s24 = scalar_lea.hbm %s388_s3, 128 }
  0xfe   :  { %p287_p5 = scmp.ne.s32.totalorder %s388_s3, %s286_s24  ;;  %p290_p6 = scmp.lt.u32.totalorder %s286_s24, %s388_s3 }
 0x100   :  { %p292_p7 = pnand %p290_p6, %p287_p5 }
 0x102   :  { %295 = shalt.err (!%p292_p7)
}
 0x103   :  { %209 = dma.vmem_to_hbm [thread:$0]  %s207_s21, 128, %s388_s3, [#allocation3]  }
 0x104   :  { %296 = dma.done.wait [#allocation3], 128  }
 0x105   :  { %297 = vsyncadd [#allocation3], 4294967168 }
 0x106   :  { %213 = vsyncpa [#allocation3], 1 }

</bundles_post_ra>
